<compile_context>
chip_gen: v6e
topology: v6e:2x2x1
jax: 0.10.0
libtpu: 0.0.40
codegen_flags: <defaults>
</compile_context>

<pallas_src>
import functools

import jax
import jax.numpy as jnp
from jax.experimental import pallas as pl
from jax.experimental.pallas import tpu as pltpu


def _round_up(v, m):
    return ((v + m - 1) // m) * m


# ---------------------------------------------------------------------------
# Fused MLP kernel: all Linear (+Sigmoid) layers in one invocation
# ---------------------------------------------------------------------------
def _mlp_fused_kernel(x_ref, *refs, n_layers, compute_dtype):
    # refs = (w0, b0, w1, b1, ..., w_{L-1}, b_{L-1}, o_ref)
    o_ref = refs[-1]
    wb = refs[:-1]

    h = x_ref[...].astype(compute_dtype)              # (TB, K)
    for i in range(n_layers):
        w = wb[2 * i][...]                             # (Ki_pad, Ni_pad)
        if w.dtype != compute_dtype:
            w = w.astype(compute_dtype)
        b = wb[2 * i + 1][...]                         # (1, Ni_pad), f32
        y = jnp.dot(h, w, preferred_element_type=jnp.float32)
        y = y + b.astype(jnp.float32)                  # broadcast over rows (f32)
        if i < n_layers - 1:
            # Sigmoid via tanh -> EUP slot (no VALU f32 divide).
            y = 0.5 * (jnp.tanh(0.5 * y) + 1.0)
            h = y.astype(compute_dtype)
        else:
            o_ref[...] = y.astype(o_ref.dtype)         # final Linear: no activation


# ---------------------------------------------------------------------------
# One-time parameter preparation: lane-pad every layer width (zero cols in
# layer i, matching zero rows in layer i+1), optionally cast weights to bf16.
# ---------------------------------------------------------------------------
def prepare_mlp_params(params, *, lane_multiple=128, weight_dtype=None):
    """Pads/casts (w, b) params once so mlp_forward does no per-call padding.

    w is stored pre-transposed as (in, out), b as (1, out) — same math as
    torch.nn.Linear.  Returns (padded_params, out_size).
    """
    out_size = params[-1][0].shape[1]
    padded = []
    prev_out_pad = params[0][0].shape[0]   # input K is left unpadded (full-dim
                                           # block is legal; avoids a per-call x pad)
    for (w, b) in params:
        k, n = w.shape
        k_pad = prev_out_pad               # zero rows kill padded-column activations
        n_pad = _round_up(n, lane_multiple)
        w = jnp.pad(w, ((0, k_pad - k), (0, n_pad - n)))
        b = jnp.pad(b, ((0, 0), (0, n_pad - n)))
        if weight_dtype is not None:
            w = w.astype(weight_dtype)     # store bf16 once, don't cast per step
        padded.append((w, jnp.asarray(b, jnp.float32)))
        prev_out_pad = n_pad
    return padded, out_size


# ---------------------------------------------------------------------------
# Wrapper: build specs, pick the batch tile, set the VMEM budget, call kernel
# ---------------------------------------------------------------------------
def mlp_forward(padded_params, out_size, x, *, batch_tile=512,
                compute_dtype=jnp.float32):
    """Full-MLP forward (hidden: Linear+Sigmoid, final: Linear) in one kernel."""
    # TODO(synk): only the 'Sigmoid' nonlinearity (module default) is mapped
    # in-kernel; other getattr(nn, ...) activations would need their own case.
    B, K = x.shape
    n_layers = len(padded_params)
    assert K == padded_params[0][0].shape[0], "x width must match first layer"
    n_pad = padded_params[-1][0].shape[1]

    # Batch tile: largest tile that fits the budget, but with >= 2 grid steps
    # once B > 16 so the "parallel" axis can shard across v7x's two TCs.
    if B <= 16:
        TB = B
    else:
        TB = min(batch_tile, _round_up(pl.cdiv(B, 2), 8), _round_up(B, 8))
    grid = (pl.cdiv(B, TB),)

    in_specs = [pl.BlockSpec((TB, K), lambda i: (i, 0))]
    flat_args = [x]
    for (w, b) in padded_params:
        kw, nw = w.shape
        # Constant block index across the grid -> single-buffer (fetched once).
        in_specs.append(pl.BlockSpec((kw, nw), lambda i: (0, 0),
                                     pipeline_mode=pl.Buffered(1)))
        in_specs.append(pl.BlockSpec((1, nw), lambda i: (0, 0),
                                     pipeline_mode=pl.Buffered(1)))
        flat_args += [w, b]

    # Explicit VMEM budget: single-buffered weights/biases + double-buffered
    # x and output tiles + the largest f32 intermediate, with headroom.
    w_bytes = sum(w.size * w.dtype.itemsize + b.size * b.dtype.itemsize
                  for (w, b) in padded_params)
    io_bytes = 2 * TB * K * x.dtype.itemsize + 2 * TB * n_pad * x.dtype.itemsize
    act_bytes = 2 * TB * max(w.shape[1] for (w, _) in padded_params) * 4
    vmem_limit = int(1.5 * (w_bytes + io_bytes + act_bytes)) + (8 << 20)
    vmem_limit = min(max(vmem_limit, 32 << 20), 64 << 20)   # legal on v5e/v6e/v7x

    kernel = functools.partial(_mlp_fused_kernel, n_layers=n_layers,
                               compute_dtype=compute_dtype)
    out_padded = pl.pallas_call(
        kernel,
        out_shape=jax.ShapeDtypeStruct((B, n_pad), x.dtype),
        grid=grid,
        in_specs=in_specs,
        out_specs=pl.BlockSpec((TB, n_pad), lambda i: (i, 0)),
        compiler_params=pltpu.CompilerParams(
            dimension_semantics=("parallel",),
            vmem_limit_bytes=vmem_limit),
    )(*flat_args)

    if n_pad == out_size:
        return out_padded
    return out_padded[:, :out_size]


# ---------------------------------------------------------------------------
# Parameter construction (mirrors nn.Linear's U(-1/sqrt(fan_in), 1/sqrt(fan_in)))
# ---------------------------------------------------------------------------
def init_mlp_params(key, input_size, output_size, layers):
    dims = [input_size] + list(layers) + [output_size]
    params = []
    for i in range(len(dims) - 1):
        n_in, n_out = dims[i], dims[i + 1]
        key, kw, kb = jax.random.split(key, 3)
        bound = 1.0 / jnp.sqrt(n_in)
        # stored pre-transposed: (in, out)
        w = jax.random.uniform(kw, (n_in, n_out), jnp.float32, -bound, bound)
        b = jax.random.uniform(kb, (1, n_out), jnp.float32, -bound, bound)
        params.append((w, b))
    return params


# ---------------------------------------------------------------------------
# Pure-JAX reference for correctness checking
# ---------------------------------------------------------------------------
def mlp_reference(params, x):
    n_layers = len(params)
    for i, (w, b) in enumerate(params):
        x = x @ w + b
        if i < n_layers - 1:
            x = jax.nn.sigmoid(x)
    return x


if __name__ == "__main__":
    key = jax.random.PRNGKey(0)
    key, k_in = jax.random.split(key)

    # Small shapes consistent with MLP(input_size=32, output_size=16, layers=[64, 48])
    batch = 8
    input_size = 32
    hidden_layers = [64, 48]
    output_size = 16

    params = init_mlp_params(key, input_size, output_size, hidden_layers)
    x = jax.random.normal(k_in, (batch, input_size), dtype=jnp.float32)

    padded_params, out_size = prepare_mlp_params(params)   # one-time padding
    out = mlp_forward(padded_params, out_size, x)
    out = jax.block_until_ready(out)

    ref = mlp_reference(params, x)
    assert out.shape == (batch, output_size)
    assert jnp.allclose(out, ref, atol=1e-4, rtol=1e-4), "mismatch vs reference"

    print("KERNEL_OK")
</pallas_src>

<mosaic_0001>
module attributes {stable_mosaic.version = 11 : i64} {
  func.func @_mlp_fused_kernel(%arg0: i32, %arg1: memref<8x32xf32, #tpu.memory_space<vmem>>, %arg2: memref<32x128xf32, #tpu.memory_space<vmem>>, %arg3: memref<1x128xf32, #tpu.memory_space<vmem>>, %arg4: memref<128x128xf32, #tpu.memory_space<vmem>>, %arg5: memref<1x128xf32, #tpu.memory_space<vmem>>, %arg6: memref<128x128xf32, #tpu.memory_space<vmem>>, %arg7: memref<1x128xf32, #tpu.memory_space<vmem>>, %arg8: memref<8x128xf32, #tpu.memory_space<vmem>>) attributes {dimension_semantics = [#tpu.dimension_semantics<parallel>], iteration_bounds = array<i64: 1>, scalar_prefetch = 0 : i64, scratch_operands = 0 : i64, tpu.core_type = #tpu.core_type<tc>, window_params = [{transform_indices = @transform_0, window_bounds = array<i64: 8, 32>}, {pipeline_mode = #tpu.pipeline_mode<synchronous>, transform_indices = @transform_1, window_bounds = array<i64: 32, 128>}, {pipeline_mode = #tpu.pipeline_mode<synchronous>, transform_indices = @transform_2, window_bounds = array<i64: 1, 128>}, {pipeline_mode = #tpu.pipeline_mode<synchronous>, transform_indices = @transform_3, window_bounds = array<i64: 128, 128>}, {pipeline_mode = #tpu.pipeline_mode<synchronous>, transform_indices = @transform_4, window_bounds = array<i64: 1, 128>}, {pipeline_mode = #tpu.pipeline_mode<synchronous>, transform_indices = @transform_5, window_bounds = array<i64: 128, 128>}, {pipeline_mode = #tpu.pipeline_mode<synchronous>, transform_indices = @transform_6, window_bounds = array<i64: 1, 128>}, {transform_indices = @transform_7, window_bounds = array<i64: 8, 128>}]} {
    %c0 = arith.constant 0 : index
    %c0_0 = arith.constant 0 : index
    %0 = vector.load %arg1[%c0, %c0_0] : memref<8x32xf32, #tpu.memory_space<vmem>>, vector<8x32xf32>
    %c0_1 = arith.constant 0 : index
    %c0_2 = arith.constant 0 : index
    %1 = vector.load %arg2[%c0_1, %c0_2] : memref<32x128xf32, #tpu.memory_space<vmem>>, vector<32x128xf32>
    %c0_3 = arith.constant 0 : index
    %c0_4 = arith.constant 0 : index
    %2 = vector.load %arg3[%c0_3, %c0_4] : memref<1x128xf32, #tpu.memory_space<vmem>>, vector<1x128xf32>
    %cst = arith.constant dense<0.000000e+00> : vector<8x128xf32>
    %3 = tpu.matmul %0, %1, %cst {dimension_numbers = #tpu.dot_dimension_numbers<[1], [0], [0], [1], [0, 0, 1, 1], [], []>} : vector<8x32xf32>, vector<32x128xf32>, vector<8x128xf32> -> vector<8x128xf32>
    %4 = vector.broadcast %2 : vector<1x128xf32> to vector<8x128xf32>
    %5 = arith.addf %3, %4 : vector<8x128xf32>
    %cst_5 = arith.constant 5.000000e-01 : f32
    %6 = vector.broadcast %cst_5 : f32 to vector<8x128xf32>
    %7 = arith.mulf %6, %5 : vector<8x128xf32>
    %8 = math.tanh %7 : vector<8x128xf32>
    %cst_6 = arith.constant 1.000000e+00 : f32
    %9 = vector.broadcast %cst_6 : f32 to vector<8x128xf32>
    %10 = arith.addf %8, %9 : vector<8x128xf32>
    %cst_7 = arith.constant 5.000000e-01 : f32
    %11 = vector.broadcast %cst_7 : f32 to vector<8x128xf32>
    %12 = arith.mulf %11, %10 : vector<8x128xf32>
    %c0_8 = arith.constant 0 : index
    %c0_9 = arith.constant 0 : index
    %13 = vector.load %arg4[%c0_8, %c0_9] : memref<128x128xf32, #tpu.memory_space<vmem>>, vector<128x128xf32>
    %c0_10 = arith.constant 0 : index
    %c0_11 = arith.constant 0 : index
    %14 = vector.load %arg5[%c0_10, %c0_11] : memref<1x128xf32, #tpu.memory_space<vmem>>, vector<1x128xf32>
    %cst_12 = arith.constant dense<0.000000e+00> : vector<8x128xf32>
    %15 = tpu.matmul %12, %13, %cst_12 {dimension_numbers = #tpu.dot_dimension_numbers<[1], [0], [0], [1], [0, 0, 1, 1], [], []>} : vector<8x128xf32>, vector<128x128xf32>, vector<8x128xf32> -> vector<8x128xf32>
    %16 = vector.broadcast %14 : vector<1x128xf32> to vector<8x128xf32>
    %17 = arith.addf %15, %16 : vector<8x128xf32>
    %cst_13 = arith.constant 5.000000e-01 : f32
    %18 = vector.broadcast %cst_13 : f32 to vector<8x128xf32>
    %19 = arith.mulf %18, %17 : vector<8x128xf32>
    %20 = math.tanh %19 : vector<8x128xf32>
    %cst_14 = arith.constant 1.000000e+00 : f32
    %21 = vector.broadcast %cst_14 : f32 to vector<8x128xf32>
    %22 = arith.addf %20, %21 : vector<8x128xf32>
    %cst_15 = arith.constant 5.000000e-01 : f32
    %23 = vector.broadcast %cst_15 : f32 to vector<8x128xf32>
    %24 = arith.mulf %23, %22 : vector<8x128xf32>
    %c0_16 = arith.constant 0 : index
    %c0_17 = arith.constant 0 : index
    %25 = vector.load %arg6[%c0_16, %c0_17] : memref<128x128xf32, #tpu.memory_space<vmem>>, vector<128x128xf32>
    %c0_18 = arith.constant 0 : index
    %c0_19 = arith.constant 0 : index
    %26 = vector.load %arg7[%c0_18, %c0_19] : memref<1x128xf32, #tpu.memory_space<vmem>>, vector<1x128xf32>
    %cst_20 = arith.constant dense<0.000000e+00> : vector<8x128xf32>
    %27 = tpu.matmul %24, %25, %cst_20 {dimension_numbers = #tpu.dot_dimension_numbers<[1], [0], [0], [1], [0, 0, 1, 1], [], []>} : vector<8x128xf32>, vector<128x128xf32>, vector<8x128xf32> -> vector<8x128xf32>
    %28 = vector.broadcast %26 : vector<1x128xf32> to vector<8x128xf32>
    %29 = arith.addf %27, %28 : vector<8x128xf32>
    %c0_21 = arith.constant 0 : index
    %c0_22 = arith.constant 0 : index
    %30 = vector.load %arg8[%c0_21, %c0_22] : memref<8x128xf32, #tpu.memory_space<vmem>>, vector<8x128xf32>
    tpu.vector_store %arg8[%c0_21, %c0_22], %29 {strides = array<i32>} : memref<8x128xf32, #tpu.memory_space<vmem>>, vector<8x128xf32>,
    return
  }
  func.func @transform_0(%arg0: i32) -> (i32, i32) {
    %c0_i32 = arith.constant 0 : i32
    %c0_i32_0 = arith.constant 0 : i32
    return %arg0, %c0_i32 : i32, i32
  }
  func.func @transform_1(%arg0: i32) -> (i32, i32) {
    %c0_i32 = arith.constant 0 : i32
    %c0_i32_0 = arith.constant 0 : i32
    %c0_i32_1 = arith.constant 0 : i32
    return %c0_i32, %c0_i32_0 : i32, i32
  }
  func.func @transform_2(%arg0: i32) -> (i32, i32) {
    %c0_i32 = arith.constant 0 : i32
    %c0_i32_0 = arith.constant 0 : i32
    %c0_i32_1 = arith.constant 0 : i32
    return %c0_i32, %c0_i32_0 : i32, i32
  }
  func.func @transform_3(%arg0: i32) -> (i32, i32) {
    %c0_i32 = arith.constant 0 : i32
    %c0_i32_0 = arith.constant 0 : i32
    %c0_i32_1 = arith.constant 0 : i32
    return %c0_i32, %c0_i32_0 : i32, i32
  }
  func.func @transform_4(%arg0: i32) -> (i32, i32) {
    %c0_i32 = arith.constant 0 : i32
    %c0_i32_0 = arith.constant 0 : i32
    %c0_i32_1 = arith.constant 0 : i32
    return %c0_i32, %c0_i32_0 : i32, i32
  }
  func.func @transform_5(%arg0: i32) -> (i32, i32) {
    %c0_i32 = arith.constant 0 : i32
    %c0_i32_0 = arith.constant 0 : i32
    %c0_i32_1 = arith.constant 0 : i32
    return %c0_i32, %c0_i32_0 : i32, i32
  }
  func.func @transform_6(%arg0: i32) -> (i32, i32) {
    %c0_i32 = arith.constant 0 : i32
    %c0_i32_0 = arith.constant 0 : i32
    %c0_i32_1 = arith.constant 0 : i32
    return %c0_i32, %c0_i32_0 : i32, i32
  }
  func.func @transform_7(%arg0: i32) -> (i32, i32) {
    %c0_i32 = arith.constant 0 : i32
    %c0_i32_0 = arith.constant 0 : i32
    return %arg0, %c0_i32 : i32, i32
  }
}

</mosaic_0001>

<bundles_post_ra>
// kernel: tpu_custom_call.1
= control target key start
LH: loop header
LB: loop body
LE: loop exit
PB: predicated region body
PF: predicated region fallthrough
CT: control target
= control target key end

     0   :  { %12 = vsyncpa [#allocation3], 0  ;;  %s747_s0 = inlined_call_operand.hbm [shape: f32[8,32], index: 0, kind: input, shape index: {}]   ;;  %s748_s1 = inlined_call_operand.hbm [shape: f32[32,128], index: 1, kind: input, shape index: {}]   ;;  %s749_s2 = inlined_call_operand.vmem [shape: f32[1,128], index: 2, kind: input, shape index: {}]   ;;  %s750_s3 = inlined_call_operand.hbm [shape: f32[128,128], index: 3, kind: input, shape index: {}]   ;;  %s751_s4 = inlined_call_operand.vmem [shape: f32[1,128], index: 4, kind: input, shape index: {}]   ;;  %s752_s5 = inlined_call_operand.hbm [shape: f32[128,128], index: 5, kind: input, shape index: {}]   ;;  %s753_s6 = inlined_call_operand.vmem [shape: f32[1,128], index: 6, kind: input, shape index: {}]   ;;  %s754_s7 = inlined_call_operand.hbm [shape: f32[8,128], index: 7, kind: output, shape index: {}]  }
   0x1   :  { %13 = vsyncpa [#allocation6], 0 }
   0x2   :  { %14 = vsyncpa [#allocation9], 0 }
   0x3   :  { %15 = vsyncpa [#allocation4], 0  ;;  %s623_s24 = smov [#allocation5]  }
   0x4   :  { %s31_s25 = sshll.u32 %s623_s24, 4  ;;  %s32_s25 = int_to_ptr.vmem [resolvable:$true] %s31_s25 }
   0x5   :  { %s523_s26 = scalar_lea.vmem %s32_s25, 512  ;;  %p528_p1 = scmp.lt.s32.totalorder %s32_s25, %s32_s25 }
   0x6   :  { %p524_p0 = scmp.ne.s32.totalorder %s32_s25, %s523_s26  ;;  %p529_p2 = scmp.lt.s32.totalorder %s523_s26, %s523_s26 }
   0x8   :  { %p530_p3 = por %p529_p2, %p528_p1 }
   0xa   :  { %p531_p4 = pnand %p530_p3, %p524_p0 }
   0xc   :  { %534 = shalt.err (!%p531_p4)
}
   0xd   :  { %s624_s27 = smov 128   ;;  %s625_s28 = smov 8  }
   0xe   :  { %37 = dma.hbm_to_vmem [thread:$0]  %s748_s1, 512, %s32_s25, [#allocation6], %s624_s27, %s624_s27, %s625_s28  }
   0xf   :  { %s626_s8 = smov [#allocation2]   ;;  %s627_s10 = smov [#allocation7]  }
  0x10   :  { %s22_s9 = sshll.u32 %s626_s8, 4  ;;  %s45_s11 = sshll.u32 %s627_s10, 4  ;;  %s23_s9 = int_to_ptr.vmem [resolvable:$true] %s22_s9  ;;  %s46_s11 = int_to_ptr.vmem [resolvable:$true] %s45_s11 }
  0x11   :  { %s543_s12 = scalar_lea.vmem %s23_s9, 128  ;;  %p548_p6 = scmp.lt.s32.totalorder %s23_s9, %s23_s9 }
  0x12   :  { %p544_p5 = scmp.ne.s32.totalorder %s23_s9, %s543_s12  ;;  %p549_p7 = scmp.lt.s32.totalorder %s543_s12, %s543_s12 }
  0x14   :  { %p550_p8 = por %p549_p7, %p548_p6 }
  0x16   :  { %p551_p9 = pnand %p550_p8, %p544_p5 }
  0x18   :  { %554 = shalt.err (!%p551_p9)
}
  0x19   :  { %25 = dma.hbm_to_vmem [thread:$0]  %s747_s0, 128, %s23_s9, [#allocation3]  }
  0x1a   :  { %s563_s15 = scalar_lea.vmem %s46_s11, 2048  ;;  %p568_p11 = scmp.lt.s32.totalorder %s46_s11, %s46_s11 }
  0x1b   :  { %p564_p10 = scmp.ne.s32.totalorder %s46_s11, %s563_s15  ;;  %p569_p12 = scmp.lt.s32.totalorder %s563_s15, %s563_s15 }
  0x1d   :  { %p570_p13 = por %p569_p12, %p568_p11 }
  0x1f   :  { %p571_p0 = pnand %p570_p13, %p564_p10 }
  0x21   :  { %574 = shalt.err (!%p571_p0)
}
  0x22   :  { %51 = dma.hbm_to_vmem [thread:$0]  %s750_s3, 2048, %s46_s11, [#allocation6], %s624_s27, %s624_s27, %s625_s28  }
  0x23   :  { %s628_s17 = smov [#allocation8]  }
  0x24   :  { %s59_s18 = sshll.u32 %s628_s17, 4  ;;  %s60_s18 = int_to_ptr.vmem [resolvable:$true] %s59_s18 }
  0x25   :  { %s583_s19 = scalar_lea.vmem %s60_s18, 2048  ;;  %p588_p2 = scmp.lt.s32.totalorder %s60_s18, %s60_s18 }
  0x26   :  { %p584_p1 = scmp.ne.s32.totalorder %s60_s18, %s583_s19  ;;  %p589_p3 = scmp.lt.s32.totalorder %s583_s19, %s583_s19 }
  0x28   :  { %p590_p4 = por %p589_p3, %p588_p2 }
  0x2a   :  { %p591_p5 = pnand %p590_p4, %p584_p1 }
  0x2c   :  { %594 = shalt.err (!%p591_p5)
}
  0x2d   :  { %65 = dma.hbm_to_vmem [thread:$0]  %s752_s5, 2048, %s60_s18, [#allocation9], %s624_s27, %s624_s27, %s625_s28  }
  0x2e   :  { %615 = dma.done.wait [#allocation3], 128  }
  0x2f   :  { %616 = vsyncadd [#allocation3], 4294967168 }
  0x30   :  { %617 = dma.done.wait [#allocation6], 2560  }
  0x31   :  { %618 = vsyncadd [#allocation6], 4294964736 }
  0x32   :  { %619 = dma.done.wait [#allocation9], 2048  }
  0x33   :  { %620 = vsyncadd [#allocation9], 4294965248  ;;  %v629_v0 = vmov 0.0   ;;  %vm630_vm0 = vmmov 0   ;;  %v84_v1 = vld [vmem:[#allocation5 + $0x18] sm:$0xff]  ;;  %v83_v2 = vld [vmem:[#allocation5 + $0x10] sm:$0xff] }
  0x34   :  { %421 = vmatprep.subr.mxu0 %v629_v0  ;;  %429 = vmatprep.mubr.msk.f32.mxu0 %vm630_vm0, %v629_v0  ;;  %v185_v3 = vld [vmem:[#allocation7 + $0x78] sm:$0xff]  ;;  %v82_v4 = vld [vmem:[#allocation5 + $0x8] sm:$0xff]  ;;  %v184_v5 = vld [vmem:[#allocation7 + $0x70] sm:$0xff]  ;;  %vm92_vm1 = vcmask 261120   ;;  %s631_s24 = smov [#allocation10]  }
  0x35   :  { %432 = vmatprep.subr.mxu1 %v629_v0  ;;  %464 = vmatprep.mubr.msk.f32.mxu1 %vm630_vm0, %v629_v0  ;;  %v183_v6 = vld [vmem:[#allocation7 + $0x68] sm:$0xff]  ;;  %v81_v7 = vld [vmem:[#allocation5] sm:$0xff]  ;;  %v80_v8 = vld [vmem:[#allocation2] sm:$0xff]  ;;  %s367_s25 = sshll.u32 %s631_s24, 4  ;;  %s368_s25 = int_to_ptr.vmem [resolvable:$true] %s367_s25 }
  0x36   :  { %422 = vmatpush3.msra.mxu0 %v84_v1  ;;  %433 = vmatpush3.msra.mxu1 %v185_v3  ;;  %v182_v9 = vld [vmem:[#allocation7 + $0x60] sm:$0xff]  ;;  %v181_v10 = vld [vmem:[#allocation7 + $0x58] sm:$0xff]  ;;  %v180_v11 = vld [vmem:[#allocation7 + $0x50] sm:$0xff]  ;;  %p600_p7 = scmp.lt.s32.totalorder %s368_s25, %s368_s25 }
  0x37   :  { %423 = vmatprep.subr.mxu0 %v629_v0  ;;  %434 = vmatprep.subr.mxu1 %v629_v0  ;;  %v179_v12 = vld [vmem:[#allocation7 + $0x48] sm:$0xff]  ;;  %v178_v13 = vld [vmem:[#allocation7 + $0x40] sm:$0xff]  ;;  %v177_v14 = vld [vmem:[#allocation7 + $0x38] sm:$0xff] }
  0x38   :  { %424 = vmatpush3.msra.mxu0 %v83_v2  ;;  %435 = vmatpush3.msra.mxu1 %v184_v5  ;;  %v176_v15 = vld [vmem:[#allocation7 + $0x30] sm:$0xff]  ;;  %v175_v16 = vld [vmem:[#allocation7 + $0x28] sm:$0xff]  ;;  %v174_v17 = vld [vmem:[#allocation7 + $0x20] sm:$0xff] }
  0x39   :  { %425 = vmatprep.subr.mxu0 %v629_v0  ;;  %436 = vmatprep.subr.mxu1 %v629_v0  ;;  %v173_v18 = vld [vmem:[#allocation7 + $0x18] sm:$0xff]  ;;  %v172_v19 = vld [vmem:[#allocation7 + $0x10] sm:$0xff]  ;;  %v171_v20 = vld [vmem:[#allocation7 + $0x8] sm:$0xff] }
  0x3a   :  { %426 = vmatpush3.msra.mxu0 %v82_v4  ;;  %437 = vmatpush3.msra.mxu1 %v183_v6  ;;  %v170_v21 = vld [vmem:[#allocation7] sm:$0xff]  ;;  %v282_v22 = vld [vmem:[#allocation8 + $0x78] sm:$0xff]  ;;  %v281_v23 = vld [vmem:[#allocation8 + $0x70] sm:$0xff] }
  0x3b   :  { %427 = vmatprep.subr.mxu0 %v629_v0  ;;  %438 = vmatprep.subr.mxu1 %v629_v0  ;;  %v280_v24 = vld [vmem:[#allocation8 + $0x68] sm:$0xff]  ;;  %v279_v25 = vld [vmem:[#allocation8 + $0x60] sm:$0xff]  ;;  %v378_v26 = vld [vmem:[%s749_s2] ss:$0 sm:$0xff] }
  0x3c   :  { %428 = vmatpush3.msra.mxu0 %v81_v7  ;;  %439 = vmatpush3.msra.mxu1 %v182_v9  ;;  %v278_v34 = vld [vmem:[#allocation8 + $0x58] sm:$0xff]  ;;  %v277_v35 = vld [vmem:[#allocation8 + $0x50] sm:$0xff]  ;;  %v276_v36 = vld [vmem:[#allocation8 + $0x48] sm:$0xff] }
  0x3d   :  { %430 = vmatmul.mubr.msk.f32.vlgmr.msra.gmra.mxu0 %vm92_vm1, %v80_v8  ;;  %440 = vmatprep.subr.mxu1 %v629_v0  ;;  %v275_v37 = vld [vmem:[#allocation8 + $0x40] sm:$0xff]  ;;  %v274_v38 = vld [vmem:[#allocation8 + $0x38] sm:$0xff]  ;;  %v273_v39 = vld [vmem:[#allocation8 + $0x30] sm:$0xff] }
  0x3e   :  { %467 = vmatprep.subr.mxu0 %v629_v0  ;;  %499 = vmatprep.mubr.msk.f32.mxu0 %vm630_vm0, %v629_v0  ;;  %v272_v40 = vld [vmem:[#allocation8 + $0x28] sm:$0xff]  ;;  %v271_v41 = vld [vmem:[#allocation8 + $0x20] sm:$0xff]  ;;  %v270_v42 = vld [vmem:[#allocation8 + $0x18] sm:$0xff] }
  0x3f   :  { %441 = vmatpush3.msra.mxu1 %v181_v10  ;;  %468 = vmatpush3.msra.mxu0 %v282_v22  ;;  %v269_v43 = vld [vmem:[#allocation8 + $0x10] sm:$0xff]  ;;  %v268_v44 = vld [vmem:[#allocation8 + $0x8] sm:$0xff]  ;;  %v267_v45 = vld [vmem:[#allocation8] sm:$0xff] }
  0x40   :  { %442 = vmatprep.subr.mxu1 %v629_v0  ;;  %469 = vmatprep.subr.mxu0 %v629_v0  ;;  %v380_v46 = vld [vmem:[%s751_s4] ss:$0 sm:$0xff]  ;;  %s595_s4 = scalar_lea.vmem %s368_s25, 128 }
  0x41   :  { %443 = vmatpush3.msra.mxu1 %v180_v11  ;;  %470 = vmatpush3.msra.mxu0 %v281_v23  ;;  %v381_v54 = vld [vmem:[%s753_s6] ss:$0 sm:$0xff]  ;;  %p596_p6 = scmp.ne.s32.totalorder %s368_s25, %s595_s4  ;;  %p601_p8 = scmp.lt.s32.totalorder %s595_s4, %s595_s4 }
  0x42   :  { %444 = vmatprep.subr.mxu1 %v629_v0  ;;  %471 = vmatprep.subr.mxu0 %v629_v0 }
  0x43   :  { %445 = vmatpush3.msra.mxu1 %v179_v12  ;;  %472 = vmatpush3.msra.mxu0 %v280_v24  ;;  %p602_p9 = por %p601_p8, %p600_p7 }
  0x44   :  { %446 = vmatprep.subr.mxu1 %v629_v0  ;;  %473 = vmatprep.subr.mxu0 %v629_v0 }
  0x45   :  { %447 = vmatpush3.msra.mxu1 %v178_v13  ;;  %474 = vmatpush3.msra.mxu0 %v279_v25  ;;  %p603_p10 = pnand %p602_p9, %p596_p6 }
  0x46   :  { %448 = vmatprep.subr.mxu1 %v629_v0  ;;  %475 = vmatprep.subr.mxu0 %v629_v0 }
  0x47   :  { %449 = vmatpush3.msra.mxu1 %v177_v14  ;;  %476 = vmatpush3.msra.mxu0 %v278_v34 }
  0x48   :  { %450 = vmatprep.subr.mxu1 %v629_v0  ;;  %477 = vmatprep.subr.mxu0 %v629_v0 }
  0x49   :  { %451 = vmatpush3.msra.mxu1 %v176_v15  ;;  %478 = vmatpush3.msra.mxu0 %v277_v35 }
  0x4a   :  { %452 = vmatprep.subr.mxu1 %v629_v0  ;;  %479 = vmatprep.subr.mxu0 %v629_v0 }
  0x4b   :  { %453 = vmatpush3.msra.mxu1 %v175_v16  ;;  %480 = vmatpush3.msra.mxu0 %v276_v36 }
  0x4c   :  { %454 = vmatprep.subr.mxu1 %v629_v0  ;;  %481 = vmatprep.subr.mxu0 %v629_v0 }
  0x4d   :  { %455 = vmatpush3.msra.mxu1 %v174_v17  ;;  %482 = vmatpush3.msra.mxu0 %v275_v37 }
  0x4e   :  { %456 = vmatprep.subr.mxu1 %v629_v0  ;;  %483 = vmatprep.subr.mxu0 %v629_v0 }
  0x4f   :  { %457 = vmatpush3.msra.mxu1 %v173_v18  ;;  %484 = vmatpush3.msra.mxu0 %v274_v38 }
  0x50   :  { %458 = vmatprep.subr.mxu1 %v629_v0  ;;  %485 = vmatprep.subr.mxu0 %v629_v0 }
  0x51   :  { %459 = vmatpush3.msra.mxu1 %v172_v19  ;;  %486 = vmatpush3.msra.mxu0 %v273_v39 }
  0x52   :  { %460 = vmatprep.subr.mxu1 %v629_v0  ;;  %487 = vmatprep.subr.mxu0 %v629_v0 }
  0x53   :  { %461 = vmatpush3.msra.mxu1 %v171_v20  ;;  %488 = vmatpush3.msra.mxu0 %v272_v40 }
  0x54   :  { %462 = vmatprep.subr.mxu1 %v629_v0  ;;  %489 = vmatprep.subr.mxu0 %v629_v0 }
  0x55   :  { %463 = vmatpush3.msra.mxu1 %v170_v21  ;;  %490 = vmatpush3.msra.mxu0 %v271_v41 }
  0x56   :  { %491 = vmatprep.subr.mxu0 %v629_v0 }
  0x57   :  { %492 = vmatpush3.msra.mxu0 %v270_v42 }
  0x58   :  { %493 = vmatprep.subr.mxu0 %v629_v0 }
  0x59   :  { %494 = vmatpush3.msra.mxu0 %v269_v43 }
  0x5a   :  { %495 = vmatprep.subr.mxu0 %v629_v0 }
  0x5b   :  { %496 = vmatpush3.msra.mxu0 %v268_v44 }
  0x5c   :  { %497 = vmatprep.subr.mxu0 %v629_v0 }
  0x5d   :  { %498 = vmatpush3.msra.mxu0 %v267_v45 }
  0xfd   :  { %v162_v27 = vpop.f32.mrf.mxu0 }
  0xfe   :  { %v163_v28 = vadd.f32 %v378_v26, %v162_v27 }
  0xff   :  { %v431_v29 = vpop.f32.mrf.mxu0 }
 0x100   :  { %v166_v30 = vmul.f32 0.5, %v163_v28 }
 0x102   :  { %511 = vtanh.f32 %v166_v30 }
 0x10f   :  { %v512_v31 = vpop.eup %511 }
 0x110   :  { %v168_v32 = vadd.f32 1.0, %v512_v31 }
 0x112   :  { %v169_v33 = vmul.f32 0.5, %v168_v32 }
 0x114   :  { %465 = vmatmul.mubr.f32.vlgmr.msra.gmra.mxu1 %v169_v33 }
 0x1d4   :  { %v259_v47 = vpop.f32.mrf.mxu1 }
 0x1d5   :  { %v260_v48 = vadd.f32 %v380_v46, %v259_v47 }
 0x1d6   :  { %v466_v49 = vpop.f32.mrf.mxu1 }
 0x1d7   :  { %v263_v50 = vmul.f32 0.5, %v260_v48 }
 0x1d9   :  { %513 = vtanh.f32 %v263_v50 }
 0x1e6   :  { %v514_v51 = vpop.eup %513 }
 0x1e7   :  { %v265_v52 = vadd.f32 1.0, %v514_v51 }
 0x1e9   :  { %v266_v53 = vmul.f32 0.5, %v265_v52 }
 0x1eb   :  { %500 = vmatmul.mubr.f32.vlgmr.msra.gmra.mxu0 %v266_v53 }
 0x2ab   :  { %v356_v55 = vpop.f32.mrf.mxu0 }
 0x2ac   :  { %v357_v56 = vadd.f32 %v381_v54, %v356_v55 }
 0x2ad   :  { %v501_v57 = vpop.f32.mrf.mxu0 }
 0x2ae   :  { %360 = vst [vmem:[#allocation10] sm:$0xff] %v357_v56 }
 0x2af   :  { %606 = shalt.err (!%p603_p10)
}
 0x2b0   :  { %370 = dma.vmem_to_hbm [thread:$0]  %s368_s25, 128, %s754_s7, [#allocation4]  }
 0x2b1   :  { %621 = dma.done.wait [#allocation4], 128  }
 0x2b2   :  { %622 = vsyncadd [#allocation4], 4294967168 }
 0x2b3   :  { %374 = vsyncpa [#allocation3], 1 }
 0x2b4   :  { %375 = vsyncpa [#allocation6], 1 }
 0x2b5   :  { %376 = vsyncpa [#allocation9], 1 }
 0x2b6   :  { %377 = vsyncpa [#allocation4], 1 }

</bundles_post_ra>
